<compile_context>
chip_gen: v5e
topology: v5e:2x2
jax: 0.10.0
libtpu: 0.0.40
codegen_flags: <defaults>
</compile_context>

<pallas_src>
import functools

import numpy as np
import jax
import jax.numpy as jnp
from jax.experimental import pallas as pl
from jax.experimental.pallas import tpu as pltpu

# ---- hyper-parameters (stand-ins for args.Fern1 / args.ST1 / args.AvgPool1_1) ----
M, K, L = 4, 3, 3          # number of ferns, bits per fern, patch size
D_OUT = 8                  # ST1['D_out']
NUM_ACTIVE_WORDS = 2       # ST1['Num_of_active_words'] (see TODO below)
POOL = 2                   # AvgPool1_1['kernel_size']
TEMP = 0.5                 # soft-bit temperature (stand-in for ambiguity thresholds / Rho)
N_WORDS = 2 ** K
LANE = 128
SUBLANE = 8


def init_params(num_channels):
    """Deterministic synthetic parameters, shapes following FernBitWord / FernSparseTable."""
    rng = np.random.default_rng(0)
    p = dict(
        dy1=rng.integers(0, L, size=(M, K)), dx1=rng.integers(0, L, size=(M, K)),
        dy2=rng.integers(0, L, size=(M, K)), dx2=rng.integers(0, L, size=(M, K)),
        c1=rng.integers(0, num_channels, size=(M, K)),
        c2=rng.integers(0, num_channels, size=(M, K)),
    )
    p["th"] = jnp.asarray(rng.normal(size=(M, K)).astype(np.float32) * 0.1)
    p["table"] = jnp.asarray(
        rng.normal(size=(M * N_WORDS, D_OUT)).astype(np.float32) * 0.1)
    return p


def _cte_kernel(d_ref, th_ref, tbl_ref, pool_ref, o_ref, voted_scr, *, B):
    """B images per grid step, all spatial positions lane-flattened.

    d_ref    : (B, MK_PAD, P_PAD)    VMEM  f32 tap differences a-c, row order k*M + m (zero-padded)
    th_ref   : (MK_PAD, 1)           VMEM  f32 thresholds, same row order
    tbl_ref  : (D_OUT, 2^K * M)      VMEM  bf16 voting table, column order w*M + m
    pool_ref : (P_PAD, Q_PAD)        VMEM  bf16 constant AvgPool2d(stride=1) + compaction matrix
    o_ref    : (B*D_OUT, Q_PAD)      VMEM  f32 pooled output maps, rows b*D_OUT + d (lane-dense)
    voted_scr: (B*D_OUT, P_PAD)      VMEM  f32 staging slab for the per-image voted maps
    """
    th = th_ref[...]                                   # (MK_PAD, 1), lane-broadcast below
    tbl = tbl_ref[...]                                 # (D_OUT, 2^K*M) bf16, hoisted out of loop
    inv_temp = 1.0 / TEMP

    # NOTE: B stays small here (<= 32 images per grid step); a lax.fori_loop would bound live
    #       ranges better for much larger B, but static indexing keeps lowering simplest.
    for b in range(B):                                 # unrolled
        d = d_ref[b]                                   # (MK_PAD, P_PAD) f32

        # ---- FernBitWord: all M*K soft bits in one lane-dense sigmoid (padded rows unused) ----
        # TODO(synk): annealing-state bookkeeping (save_fern_values / on_batch_ends) is
        #             training-time only and is not part of the forward compute.
        bits = jax.nn.sigmoid((d - th) * inv_temp)     # (MK_PAD, P_PAD) f32
        nbits = 1.0 - bits

        # word probabilities: binary tree over the K bits, vectorized over the M ferns.
        # rows are ordered k*M + m, so bits[k*M:(k+1)*M] is bit k for all ferns.
        cur = [nbits[0:M, :], bits[0:M, :]]            # index = value of bit 0
        for k in range(1, K):
            nb_k = nbits[k * M:(k + 1) * M, :]
            b_k = bits[k * M:(k + 1) * M, :]
            cur = [lo * hi for hi in (nb_k, b_k) for lo in cur]   # index = sum bit_k * 2^k

        # word-probability slab stays in vregs (no scratch round-trip), rows ordered w*M + m.
        probs = jnp.concatenate(cur, axis=0)           # (2^K*M, P_PAD) f32

        # ---- FernSparseTable voting: one small bf16 MXU matmul per image ----
        # TODO(synk): Num_of_active_words top-A sparse word selection is data-dependent;
        #             implemented here as the dense (all 2^K words) soft vote.
        voted = jnp.dot(tbl, probs.astype(jnp.bfloat16),
                        preferred_element_type=jnp.float32)        # (D_OUT, P_PAD) f32
        # stage at an 8-row-aligned offset (D_OUT == 8): clean unmasked full-tile stores.
        voted_scr[pl.ds(b * D_OUT, D_OUT), :] = voted

    # ---- AvgPool2d(POOL, stride=1): ONE batched MXU matmul for all B images of this step ----
    # (B*D_OUT rows fill the MXU height; pool matrix is a constant 0/0.25 matrix, exact in bf16.)
    pooled = jnp.dot(voted_scr[...].astype(jnp.bfloat16), pool_ref[...],
                     preferred_element_type=jnp.float32)           # (B*D_OUT, Q_PAD) f32
    o_ref[...] = pooled.astype(o_ref.dtype)


def cte_forward(x, params, imgs_per_step=32):
    """x: (N, C, H, W) float32 (NCHW, as in PyTorch). Returns (N, D_out*Hp*Wp)."""
    N, C, H, W = x.shape
    Ho, Wo = H - L + 1, W - L + 1
    Hp, Wp = Ho - POOL + 1, Wo - POOL + 1
    P, Q = Ho * Wo, Hp * Wp
    P_PAD = pl.cdiv(P, LANE) * LANE
    Q_PAD = pl.cdiv(Q, LANE) * LANE
    MK = M * K
    MK_PAD = pl.cdiv(MK, SUBLANE) * SUBLANE            # 12 -> 16: exactly two (8,128) tiles

    xf = x.astype(jnp.float32)
    dy1, dx1, dy2, dx2, c1, c2 = (np.asarray(params[k])
                                  for k in ("dy1", "dx1", "dy2", "dx2", "c1", "c2"))

    # im2col-style tap gather + difference (pure layout plumbing, one subtract): one lane-dense
    # row of Ho*Wo pixels per (bit, fern). Row order k*M + m so the kernel slices contiguously.
    # Shipping only the difference halves the dominant HBM stream vs shipping both taps.
    d_rows = []
    for k in range(K):
        for m in range(M):
            a = xf[:, c1[m, k], dy1[m, k]:dy1[m, k] + Ho, dx1[m, k]:dx1[m, k] + Wo].reshape(N, P)
            c = xf[:, c2[m, k], dy2[m, k]:dy2[m, k] + Ho, dx2[m, k]:dx2[m, k] + Wo].reshape(N, P)
            d_rows.append(a - c)                       # keep the difference in f32 (cancellation)
    diffs = jnp.stack(d_rows, axis=1)                  # (N, MK, P)
    diffs = jnp.pad(diffs, ((0, 0), (0, MK_PAD - MK), (0, P_PAD - P)))   # (N, MK_PAD, P_PAD)

    # thresholds as a (MK_PAD, 1) column, row order k*M + m (padded rows unused)
    th_col = jnp.pad(jnp.asarray(params["th"]).T.reshape(MK, 1), ((0, MK_PAD - MK), (0, 0)))

    # voting table transposed and column-permuted to order w*M + m (matches kernel prob rows),
    # stored bf16 (MXU operand).
    tbl_t = jnp.transpose(jnp.asarray(params["table"]).reshape(M, N_WORDS, D_OUT),
                          (2, 1, 0)).reshape(D_OUT, N_WORDS * M).astype(jnp.bfloat16)

    # constant AvgPool2d(POOL, stride=1) + compaction matrix over flattened positions:
    # pooled[:, oi*Wp+oj] = mean over the POOLxPOOL window at (oi, oj). 0/0.25 is exact in bf16.
    # Padded rows (>= P) / columns (>= Q) are zero, so lane-padding garbage never leaks.
    # TODO(synk): for large spatial inputs this dense (P_PAD, Q_PAD) matrix grows quadratically
    #             (VMEM risk on v7x); switch to separable row/col pooling or pltpu.roll shifts there.
    pool_np = np.zeros((P_PAD, Q_PAD), np.float32)
    wgt = 1.0 / (POOL * POOL)
    for oi in range(Hp):
        for oj in range(Wp):
            for di in range(POOL):
                for dj in range(POOL):
                    pool_np[(oi + di) * Wo + (oj + dj), oi * Wp + oj] = wgt
    pool_mat = jnp.asarray(pool_np, dtype=jnp.bfloat16)

    # images per grid step: large enough to fill the MXU rows of the batched pooling matmul,
    # but capped at ceil(N/2) so the grid has >= 2 steps (v7x: both TensorCores get work).
    B = max(1, min(imgs_per_step, pl.cdiv(N, 2)))
    Npad = pl.cdiv(N, B) * B
    if Npad != N:
        diffs = jnp.pad(diffs, ((0, Npad - N), (0, 0), (0, 0)))

    out = pl.pallas_call(
        functools.partial(_cte_kernel, B=B),
        out_shape=jax.ShapeDtypeStruct((Npad * D_OUT, Q_PAD), jnp.float32),
        grid=(Npad // B,),
        in_specs=[
            pl.BlockSpec((B, MK_PAD, P_PAD), lambda n: (n, 0, 0)),     # tap differences
            pl.BlockSpec((MK_PAD, 1), lambda n: (0, 0)),               # thresholds
            pl.BlockSpec((D_OUT, N_WORDS * M), lambda n: (0, 0)),      # voting table (MXU LHS)
            pl.BlockSpec((P_PAD, Q_PAD), lambda n: (0, 0)),            # pooling matrix
        ],
        # grid-constant inputs above could be single-buffered (pipeline_mode) on VMEM-tight
        # configs; at these sizes the default double-buffering costs < 0.5 MiB, so left as-is.
        out_specs=pl.BlockSpec((B * D_OUT, Q_PAD), lambda n: (n, 0)),
        scratch_shapes=[pltpu.VMEM((B * D_OUT, P_PAD), jnp.float32)],
        compiler_params=pltpu.CompilerParams(dimension_semantics=("parallel",)),
    )(diffs, th_col, tbl_t, pool_mat)

    # drop lane padding / batch padding; NCHW flatten (same order as torch .view(N, -1))
    out = out.reshape(Npad, D_OUT, Q_PAD)[:N, :, :Q]
    return out.reshape(N, -1)


def cte_reference(x, params):
    """Pure-JAX full-precision reference with identical semantics (for correctness check)."""
    N, C, H, W = x.shape
    Ho, Wo = H - L + 1, W - L + 1
    Hp, Wp = Ho - POOL + 1, Wo - POOL + 1
    dy1, dx1, dy2, dx2, c1, c2 = (np.asarray(params[k])
                                  for k in ("dy1", "dx1", "dy2", "dx2", "c1", "c2"))
    th, table = params["th"], params["table"]
    xf = x.astype(jnp.float32)
    probs = []
    for m in range(M):
        bits = []
        for k in range(K):
            a = xf[:, c1[m, k], dy1[m, k]:dy1[m, k] + Ho, dx1[m, k]:dx1[m, k] + Wo]
            b = xf[:, c2[m, k], dy2[m, k]:dy2[m, k] + Ho, dx2[m, k]:dx2[m, k] + Wo]
            bits.append(jax.nn.sigmoid((a - b - th[m, k]) / TEMP))
        for w in range(N_WORDS):
            p = jnp.ones((N, Ho, Wo), jnp.float32)
            for k in range(K):
                p = p * (bits[k] if (w >> k) & 1 else (1.0 - bits[k]))
            probs.append(p)
    probs = jnp.stack(probs, axis=1)                         # (N, M*2^K, Ho, Wo)
    voted = jnp.einsum("nvhw,vd->ndhw", probs, table,
                       precision=jax.lax.Precision.HIGHEST)  # (N, D_out, Ho, Wo)
    pooled = sum(voted[:, :, di:di + Hp, dj:dj + Wp]
                 for di in range(POOL) for dj in range(POOL)) / (POOL * POOL)
    return pooled.reshape(N, -1)


if __name__ == "__main__":
    N, C, H, W = 2, 4, 16, 16
    key = jax.random.PRNGKey(0)
    x = jax.random.normal(key, (N, C, H, W), dtype=jnp.float32)
    params = init_params(C)

    out = jax.block_until_ready(cte_forward(x, params))

    Hp = (H - L + 1) - POOL + 1
    assert out.shape == (N, D_OUT * Hp * Hp), out.shape

    ref = cte_reference(x, params)
    # tolerance covers bf16 MXU operands (probs/table/voted/pool) with f32 accumulation
    np.testing.assert_allclose(np.asarray(out), np.asarray(ref), rtol=1e-2, atol=1e-2)
    print("KERNEL_OK")
</pallas_src>

<mosaic_0001>
module attributes {stable_mosaic.version = 11 : i64} {
  func.func @_cte_kernel(%arg0: i32, %arg1: memref<1x16x256xf32, #tpu.memory_space<vmem>>, %arg2: memref<16x1xf32, #tpu.memory_space<vmem>>, %arg3: memref<8x32xbf16, #tpu.memory_space<vmem>>, %arg4: memref<256x256xbf16, #tpu.memory_space<vmem>>, %arg5: memref<8x256xf32, #tpu.memory_space<vmem>>, %arg6: memref<8x256xf32, #tpu.memory_space<vmem>>) attributes {dimension_semantics = [#tpu.dimension_semantics<parallel>], iteration_bounds = array<i64: 2>, scalar_prefetch = 0 : i64, scratch_operands = 1 : i64, tpu.core_type = #tpu.core_type<tc>, window_params = [{transform_indices = @transform_0, window_bounds = array<i64: 1, 16, 256>}, {pipeline_mode = #tpu.pipeline_mode<synchronous>, transform_indices = @transform_1, window_bounds = array<i64: 16, 1>}, {pipeline_mode = #tpu.pipeline_mode<synchronous>, transform_indices = @transform_2, window_bounds = array<i64: 8, 32>}, {pipeline_mode = #tpu.pipeline_mode<synchronous>, transform_indices = @transform_3, window_bounds = array<i64: 256, 256>}, {transform_indices = @transform_4, window_bounds = array<i64: 8, 256>}]} {
    %c0 = arith.constant 0 : index
    %c0_0 = arith.constant 0 : index
    %0 = vector.load %arg2[%c0, %c0_0] : memref<16x1xf32, #tpu.memory_space<vmem>>, vector<16x1xf32>
    %c0_1 = arith.constant 0 : index
    %c0_2 = arith.constant 0 : index
    %1 = vector.load %arg3[%c0_1, %c0_2] : memref<8x32xbf16, #tpu.memory_space<vmem>>, vector<8x32xbf16>
    %c0_3 = arith.constant 0 : index
    %c0_4 = arith.constant 0 : index
    %c0_5 = arith.constant 0 : index
    %2 = vector.load %arg1[%c0_3, %c0_4, %c0_5] : memref<1x16x256xf32, #tpu.memory_space<vmem>>, vector<1x16x256xf32>
    %3 = vector.shape_cast %2 : vector<1x16x256xf32> to vector<16x256xf32>
    %4 = vector.broadcast %0 : vector<16x1xf32> to vector<16x256xf32>
    %5 = arith.subf %3, %4 : vector<16x256xf32>
    %cst = arith.constant 2.000000e+00 : f32
    %6 = vector.broadcast %cst : f32 to vector<16x256xf32>
    %7 = arith.mulf %5, %6 : vector<16x256xf32>
    %8 = arith.negf %7 : vector<16x256xf32>
    %9 = math.exp %8 : vector<16x256xf32>
    %cst_6 = arith.constant 1.000000e+00 : f32
    %10 = vector.broadcast %cst_6 : f32 to vector<16x256xf32>
    %11 = arith.addf %10, %9 : vector<16x256xf32>
    %12 = arith.divf %10, %11 : vector<16x256xf32>
    %cst_7 = arith.constant 1.000000e+00 : f32
    %13 = vector.broadcast %cst_7 : f32 to vector<16x256xf32>
    %14 = arith.subf %13, %12 : vector<16x256xf32>
    %15 = vector.extract_strided_slice %14 {offsets = [0, 0], sizes = [4, 256], strides = [1, 1]} : vector<16x256xf32> to vector<4x256xf32>
    %16 = vector.extract_strided_slice %12 {offsets = [0, 0], sizes = [4, 256], strides = [1, 1]} : vector<16x256xf32> to vector<4x256xf32>
    %17 = vector.extract_strided_slice %14 {offsets = [4, 0], sizes = [4, 256], strides = [1, 1]} : vector<16x256xf32> to vector<4x256xf32>
    %18 = vector.extract_strided_slice %12 {offsets = [4, 0], sizes = [4, 256], strides = [1, 1]} : vector<16x256xf32> to vector<4x256xf32>
    %19 = arith.mulf %15, %17 : vector<4x256xf32>
    %20 = arith.mulf %16, %17 : vector<4x256xf32>
    %21 = arith.mulf %15, %18 : vector<4x256xf32>
    %22 = arith.mulf %16, %18 : vector<4x256xf32>
    %23 = vector.extract_strided_slice %14 {offsets = [8, 0], sizes = [4, 256], strides = [1, 1]} : vector<16x256xf32> to vector<4x256xf32>
    %24 = vector.extract_strided_slice %12 {offsets = [8, 0], sizes = [4, 256], strides = [1, 1]} : vector<16x256xf32> to vector<4x256xf32>
    %25 = arith.mulf %19, %23 : vector<4x256xf32>
    %26 = arith.mulf %20, %23 : vector<4x256xf32>
    %27 = arith.mulf %21, %23 : vector<4x256xf32>
    %28 = arith.mulf %22, %23 : vector<4x256xf32>
    %29 = arith.mulf %19, %24 : vector<4x256xf32>
    %30 = arith.mulf %20, %24 : vector<4x256xf32>
    %31 = arith.mulf %21, %24 : vector<4x256xf32>
    %32 = arith.mulf %22, %24 : vector<4x256xf32>
    %33 = tpu.concatenate %25, %26, %27, %28, %29, %30, %31, %32 in 0 : vector<4x256xf32>, vector<4x256xf32>, vector<4x256xf32>, vector<4x256xf32>, vector<4x256xf32>, vector<4x256xf32>, vector<4x256xf32>, vector<4x256xf32> -> vector<32x256xf32>
    %34 = arith.truncf %33 : vector<32x256xf32> to vector<32x256xbf16>
    %cst_8 = arith.constant dense<0.000000e+00> : vector<8x256xf32>
    %35 = tpu.matmul %1, %34, %cst_8 {dimension_numbers = #tpu.dot_dimension_numbers<[1], [0], [0], [1], [0, 0, 1, 1], [], []>} : vector<8x32xbf16>, vector<32x256xbf16>, vector<8x256xf32> -> vector<8x256xf32>
    %c0_9 = arith.constant 0 : index
    %c0_10 = arith.constant 0 : index
    %36 = vector.load %arg6[%c0_9, %c0_10] : memref<8x256xf32, #tpu.memory_space<vmem>>, vector<8x256xf32>
    tpu.vector_store %arg6[%c0_9, %c0_10], %35 {strides = array<i32>} : memref<8x256xf32, #tpu.memory_space<vmem>>, vector<8x256xf32>,
    %c0_11 = arith.constant 0 : index
    %c0_12 = arith.constant 0 : index
    %37 = vector.load %arg6[%c0_11, %c0_12] : memref<8x256xf32, #tpu.memory_space<vmem>>, vector<8x256xf32>
    %38 = arith.truncf %37 : vector<8x256xf32> to vector<8x256xbf16>
    %c0_13 = arith.constant 0 : index
    %c0_14 = arith.constant 0 : index
    %39 = vector.load %arg4[%c0_13, %c0_14] : memref<256x256xbf16, #tpu.memory_space<vmem>>, vector<256x256xbf16>
    %cst_15 = arith.constant dense<0.000000e+00> : vector<8x256xf32>
    %40 = tpu.matmul %38, %39, %cst_15 {dimension_numbers = #tpu.dot_dimension_numbers<[1], [0], [0], [1], [0, 0, 1, 1], [], []>} : vector<8x256xbf16>, vector<256x256xbf16>, vector<8x256xf32> -> vector<8x256xf32>
    %c0_16 = arith.constant 0 : index
    %c0_17 = arith.constant 0 : index
    %41 = vector.load %arg5[%c0_16, %c0_17] : memref<8x256xf32, #tpu.memory_space<vmem>>, vector<8x256xf32>
    tpu.vector_store %arg5[%c0_16, %c0_17], %40 {strides = array<i32>} : memref<8x256xf32, #tpu.memory_space<vmem>>, vector<8x256xf32>,
    return
  }
  func.func @transform_0(%arg0: i32) -> (i32, i32, i32) {
    %c0_i32 = arith.constant 0 : i32
    %c0_i32_0 = arith.constant 0 : i32
    %c0_i32_1 = arith.constant 0 : i32
    return %arg0, %c0_i32, %c0_i32_0 : i32, i32, i32
  }
  func.func @transform_1(%arg0: i32) -> (i32, i32) {
    %c0_i32 = arith.constant 0 : i32
    %c0_i32_0 = arith.constant 0 : i32
    %c0_i32_1 = arith.constant 0 : i32
    return %c0_i32, %c0_i32_0 : i32, i32
  }
  func.func @transform_2(%arg0: i32) -> (i32, i32) {
    %c0_i32 = arith.constant 0 : i32
    %c0_i32_0 = arith.constant 0 : i32
    %c0_i32_1 = arith.constant 0 : i32
    return %c0_i32, %c0_i32_0 : i32, i32
  }
  func.func @transform_3(%arg0: i32) -> (i32, i32) {
    %c0_i32 = arith.constant 0 : i32
    %c0_i32_0 = arith.constant 0 : i32
    %c0_i32_1 = arith.constant 0 : i32
    return %c0_i32, %c0_i32_0 : i32, i32
  }
  func.func @transform_4(%arg0: i32) -> (i32, i32) {
    %c0_i32 = arith.constant 0 : i32
    %c0_i32_0 = arith.constant 0 : i32
    return %arg0, %c0_i32 : i32, i32
  }
}

</mosaic_0001>

<bundles_post_ra>
// kernel: tpu_custom_call.1
= control target key start
LH: loop header
LB: loop body
LE: loop exit
PB: predicated region body
PF: predicated region fallthrough
CT: control target
= control target key end

     0   :  { %9 = vsyncpa [#allocation4], 0  ;;  %s1432_s0 = inlined_call_operand.hbm [shape: f32[2,16,256], index: 0, kind: input, shape index: {}]   ;;  %s1433_s1 = inlined_call_operand.vmem [shape: f32[16,1], index: 1, kind: input, shape index: {}]   ;;  %s1434_s2 = inlined_call_operand.vmem [shape: bf16[8,32], index: 2, kind: input, shape index: {}]   ;;  %s1435_s3 = inlined_call_operand.hbm [shape: bf16[256,256], index: 3, kind: input, shape index: {}]   ;;  %s1436_s4 = inlined_call_operand.hbm [shape: f32[16,256], index: 4, kind: output, shape index: {}]  }
   0x1   :  { %11 = vsyncpa [#allocation4 + $0x1], 0 }
   0x2   :  { %12 = vsyncpa [#allocation7], 0 }
   0x3   :  { %13 = vsyncpa [#allocation5], 0 }
   0x4   :  { %15 = vsyncpa [#allocation5 + $0x1], 0  ;;  %s1219_s15 = smov 0   ;;  %s1221_s16 = smov 0  }
   0x5   :  { %s1223_s17 = smov 0   ;;  %s1225_s18 = smov 0  }
   0x6 LB: > { %s1240_s19 = sadd.s32 4294967295, %s1186_s18   ;;  %s793_s20 = sadd.s32 4294967294, %s1186_s18   ;;  %s1186_s18 = sphi %s1225_s18, %s1454_s18   ;;  %s1182_s17 = sphi %s1223_s17, %s1453_s17   ;;  %s1178_s16 = sphi %s1221_s16, %s1452_s16   ;;  %s1174_s15 = sphi %s1219_s15, %s1451_s15  }
   0x7   : > { %p41_p0 = scmp.ne.s32.totalorder %s1178_s16, %s1174_s15  ;;  %p42_p1 = scmp.eq.s32.totalorder %s1240_s19, 0 }
   0x8   : > { %p128_p2 = scmp.eq.s32.totalorder %s1240_s19, 1  ;;  %p134_p3 = scmp.eq.s32.totalorder %s793_s20, 1 }
   0x9   : > { %p1249_p4 = por %p42_p1, %p41_p0  ;;  %p794_p5 = scmp.ge.s32.totalorder %s1186_s18, 1 }
   0xa   : > { %p1254_p6 = por %p134_p3, %p41_p0  ;;  %p141_p7 = scmp.lt.s32.totalorder %s1186_s18, 3 }
   0xb   : > { %s158_s25 = sshll.u32 %s1435_s3, 4  ;;  %s1188_s27 = smov [#allocation6]   ;;  %s159_s25 = int_to_ptr.hbm [resolvable:$true] %s158_s25 }
   0xc   : > { %p1262_p8 = pnand %p794_p5, %p141_p7  ;;  %s160_s28 = sshll.u32 %s1188_s27, 4  ;;  %s161_s28 = int_to_ptr.vmem [resolvable:$true] %s160_s28 }
   0xd   : > { %s1272_s29 = sadd.s32 1, %s1186_s18   ;;  %s1189_s30 = smov 128  }
   0xe   : > { %p985_p9 = pneg %p1262_p8  ;;  %s1190_s5 = smov 8  }
   0xf   : > { %s25_s6 = ssub.s32 %s1186_s18, %s1272_s29  ;;  %s28_s7 = sadd.s32 1, %s1182_s17 }
  0x10   : > { %p986_p10 = pnand %p985_p9, %p42_p1  ;;  %p26_p12 = scmp.eq.s32.totalorder %s25_s6, 0 }
  0x11   : > { %p35_p13 = scmp.ne.s32.totalorder %s1182_s17, %s1178_s16  ;;  %p36_p0 = scmp.eq.s32.totalorder %s1186_s18, 0 }
  0x12   : > { %988 = dma.hbm_to_vmem [thread:$0]  (!%p986_p10), %s159_s25, 4096, %s161_s28, [#allocation7], %s1189_s30, %s1189_s30, %s1190_s5  }
  0x13   : > { %p998_p3 = scmp.lt.s32.totalorder %s1186_s18, 2  ;;  %p37_p5 = por %p36_p0, %p35_p13 }
  0x14   : > { %s1282_s8 = scalar_select %p26_p12, %s1182_s17, %s28_s7  }
  0x15   : > { %p1286_p7 = por %p128_p2, %p35_p13  ;;  %s174_s10 = sand.u32 1, %s1182_s17  }
  0x16   : > { %s943_s11 = sshll.u32 %s1186_s18, 5  ;;  %s797_s12 = sshll.u32 %s174_s10, 5 }
  0x17   : > { %s183_s20 = scalar_lea.hbm %s1432_s0, %s943_s11  ;;  %s178_s24 = scalar_lea.vmem [#allocation3], %s797_s12 }
  0x18   : > { %s184_s23 = sshll.u32 %s183_s20, 4  ;;  %s186_s25 = sshll.u32 %s178_s24, 4  ;;  %s185_s23 = int_to_ptr.hbm [resolvable:$true] %s184_s23  ;;  %s187_s25 = int_to_ptr.vmem [resolvable:$true] %s186_s25 }
  0x19   : > { %p1297_p9 = pnand %p998_p3, %p37_p5  ;;  %s175_s28 = scalar_lea.sflag [#allocation4], %s174_s10 }
  0x1a   : > { %s1086_s30 = sshra.s32 %s185_s23, 4  ;;  %s1093_s11 = scalar_lea.hbm %s1432_s0, 64  ;;  %s1087_s30 = int_to_ptr.hbm [resolvable:$true] %s1086_s30 }
  0x1b   : > { %s1088_s5 = scalar_lea.hbm %s1087_s30, 32  ;;  %p1090_p10 = pneg %p1297_p9 }
  0x1c   : > { %p1089_p2 = scmp.ne.s32.totalorder %s1087_s30, %s1088_s5  ;;  %p1094_p0 = scmp.lt.s32.totalorder %s1087_s30, %s1432_s0 }
  0x1d   : > { %p1095_p3 = scmp.lt.s32.totalorder %s1093_s11, %s1088_s5 }
  0x1e   : > { %p1091_p12 = pnand %p1090_p10, %p1089_p2 }
  0x1f   : > { %p1096_p5 = por %p1095_p3, %p1094_p0 }
  0x20   : > { %p1092_p13 = pneg %p1091_p12 }
  0x22   : > { %p1097_p11 = pnand %p1096_p5, %p1092_p13 }
  0x24   : > { %1100 = shalt.err (!%p1097_p11)
}
  0x25   : > { %s1191_s10 = smov 256   ;;  %s1192_s14 = smov 16  }
  0x26   : > { %992 = dma.hbm_to_vmem [thread:$0]  (!%p1297_p9), %s185_s23, 512, %s187_s25, %s175_s28, %s1191_s10, %s1191_s10, %s1192_s14  }
  0x27   : > { %198 = sbr.rel (%p1262_p8) target bundleno = 490 (0x1ea), region = 36  ;;  %s1314_s20 = sand.u32 (!%p1262_p8), 1, %s1178_s16  }
  0x28   : > { %s801_s24 = sshll.u32 (!%p1262_p8), %s1314_s20, 5  ;;  %s201_s30 = scalar_lea.sflag (!%p1262_p8), [#allocation4], %s1314_s20 }
  0x29   : > { %s204_s5 = scalar_lea.vmem (!%p1262_p8), [#allocation3], %s801_s24 }
  0x2c   : > { %1161 = dma.done.wait (%p1249_p4), %s201_s30, 512  }
  0x2d   : > { %1163 = vsyncadd (%p1249_p4), %s201_s30, 4294966784 }
  0x2e   : > { %1165 = dma.done.wait (%p42_p1), [#allocation7], 4096  }
  0x2f   : > { %1167 = vsyncadd (%p42_p1), [#allocation7], 4294963200  ;;  %v1193_v0 = vmov 0   ;;  %v236_v1 = vld [vmem:[%s1433_s1] sm:$0xff]  ;;  %v237_v2 = vld [vmem:[%s1433_s1 + $0x8] sm:$0xff]  ;;  %vm401_vm10 = vcmask 1043456  }
  0x30   : > { %1039 = vset.pattern.permute.xlu0 %v1193_v0  ;;  %v239_v3 = vld [vmem:[%s204_s5] sm:$0xff]  ;;  %v240_v4 = vld [vmem:[%s204_s5 + $0x8] sm:$0xff]  ;;  %v241_v12 = vld [vmem:[%s204_s5 + $0x10] sm:$0xff]  ;;  %s803_s6 = sshll.u32 %s1314_s20, 4  ;;  %s976_s7 = sshll.u32 %s1240_s19, 4 }
  0x31   : > { %245 = vperm.xlu0 %1039, %v236_v1   ;;  %v242_v13 = vld [vmem:[%s204_s5 + $0x18] sm:$0xff]  ;;  %v868_v44 = vld [vmem:[#allocation6 + $0x70] sm:$0xf]  ;;  %s708_s13 = scalar_lea.hbm %s1436_s4, %s976_s7  ;;  %s234_s10 = scalar_lea.vmem [#allocation8], %s803_s6 }
  0x32   : > { %v959_v47 = vld [vmem:[#allocation6 + $0x74] sm:$0xf0]  ;;  %v932_v48 = vld [vmem:[#allocation6 + $0xf0] sm:$0xf]  ;;  %v870_v1 = vld [vmem:[#allocation6 + $0x78] sm:$0xf0] }
  0x33   : > { %v869_v53 = vor.u32 %v959_v47, %v868_v44  ;;  %v975_v54 = vld [vmem:[#allocation6 + $0xf4] sm:$0xf0]  ;;  %v969_v44 = vld [vmem:[#allocation6 + $0xc4] sm:$0xf0]  ;;  %s710_s14 = sshll.u32 %s234_s10, 4  ;;  %s712_s24 = sshll.u32 %s708_s13, 4  ;;  %s711_s14 = int_to_ptr.vmem [resolvable:$true] %s710_s14  ;;  %s713_s24 = int_to_ptr.hbm [resolvable:$true] %s712_s24 }
  0x34   : > { %v933_v58 = vor.u32 %v975_v54, %v932_v48  ;;  %s697_s19 = scalar_lea.sflag [#allocation5], %s1314_s20  ;;  %s1130_s30 = sshra.s32 %s713_s24, 4  ;;  %s1131_s30 = int_to_ptr.hbm [resolvable:$true] %s1130_s30 }
  0x35   : > { %642 = vmatpush.bf16.msra.mxu2 %v869_v53  ;;  %s1132_s5 = scalar_lea.hbm %s1131_s30, 16  ;;  %s1136_s25 = scalar_lea.hbm %s1436_s4, 32 }
  0x36   : > { %655 = vmatpush.bf16.msra.mxu3 %v933_v58  ;;  %p1133_p1 = scmp.ne.s32.totalorder %s1131_s30, %s1132_s5  ;;  %p1137_p11 = scmp.lt.s32.totalorder %s1131_s30, %s1436_s4 }
  0x37   : > { %p1138_p9 = scmp.lt.s32.totalorder %s1136_s25, %s1132_s5 }
  0x38   : > { %p1134_p4 = pnand %p1133_p1, %p1286_p7 }
  0x39   : > { %250 = vperm.xlu0 %1039, %v237_v2   ;;  %p1139_p2 = por %p1138_p9, %p1137_p11 }
  0x3a   : > { %p1135_p8 = pneg %p1134_p4 }
  0x3c   : > { %p1140_p10 = pnand %p1139_p2, %p1135_p8 }
  0xa3   : > { %v246_v5 = vpop.permute.xlu0 %245 }
  0xa4   : > { %v253_v6 = vsub.f32 %v239_v3, %v246_v5  ;;  %v254_v7 = vsub.f32 %v240_v4, %v246_v5 }
  0xa6   : > { %v804_v8 = vmul.f32 -2.0, %v253_v6  ;;  %v805_v9 = vmul.f32 -2.0, %v254_v7  ;;  %v860_v7 = vld [vmem:[#allocation6 + $0x60] sm:$0xf] }
  0xa8   : > { %v265_v10 = vmul.f32 1.442695, %v804_v8  ;;  %v267_v11 = vmul.f32 1.442695, %v805_v9  ;;  %v957_v8 = vld [vmem:[#allocation6 + $0x64] sm:$0xf0] }
  0xaa   : > { %1040 = vpow2.f32 %v265_v10 }
  0xab   : > { %1042 = vpow2.f32 %v267_v11  ;;  %v251_v14 = vpop.permute.xlu0 %250 }
  0xac   : > { %v255_v15 = vsub.f32 %v241_v12, %v251_v14  ;;  %v256_v16 = vsub.f32 %v242_v13, %v251_v14  ;;  %v924_v12 = vld [vmem:[#allocation6 + $0xe0] sm:$0xf]  ;;  %v973_v13 = vld [vmem:[#allocation6 + $0xe4] sm:$0xf0] }
  0xae   : > { %v806_v17 = vmul.f32 -2.0, %v255_v15  ;;  %v807_v18 = vmul.f32 -2.0, %v256_v16 }
  0xb0   : > { %v1041_v19 = vpop.eup %1040  ;;  %v269_v20 = vmul.f32 1.442695, %v806_v17  ;;  %v271_v23 = vmul.f32 1.442695, %v807_v18  ;;  %v852_v18 = vld [vmem:[#allocation6 + $0x50] sm:$0xf] }
  0xb1   : > { %v1043_v21 = vpop.eup %1042  ;;  %v273_v22 = vadd.f32 1.0, %v1041_v19 }
  0xb2   : > { %v274_v24 = vadd.f32 1.0, %v1043_v21  ;;  %1044 = vpow2.f32 %v269_v20  ;;  %v861_v20 = vor.u32 %v957_v8, %v860_v7  ;;  %v955_v21 = vld [vmem:[#allocation6 + $0x54] sm:$0xf0] }
  0xb3   : > { %1046 = vrcp.f32 %v273_v22  ;;  %v286_v32 = vand.u32 2147483647, %v273_v22  ;;  %v288_v33 = vand.u32 2147483648, %v273_v22  ;;  %vm282_vm3 = vweird.f32 %v273_v22  ;;  %v951_v7 = vld [vmem:[#allocation6 + $0x34] sm:$0xf0] }
  0xb4   : > { %1048 = vrcp.f32 %v274_v24  ;;  %v301_v37 = vand.u32 2147483647, %v274_v24  ;;  %v303_v38 = vand.u32 2147483648, %v274_v24  ;;  %vm297_vm4 = vweird.f32 %v274_v24  ;;  %643 = vmatpush.bf16.msra.mxu2 %v861_v20 }
  0xb5   : > { %1050 = vpow2.f32 %v271_v23  ;;  %vm1339_vm1 = vcmp.eq.f32.partialorder %v286_v32, 8.507059e+37  ;;  %v289_v43 = vor.u32 1.1754944e-38, %v288_v33  ;;  %v971_v23 = vld [vmem:[#allocation6 + $0xd4] sm:$0xf0]  ;;  %v853_v32 = vor.u32 %v955_v21, %v852_v18  ;;  %v974_v21 = vld [vmem:[#allocation6 + $0xf4] sm:$0xf] }
  0xb6   : > { %vm1344_vm6 = vcmp.eq.f32.partialorder %v301_v37, 8.507059e+37  ;;  %v304_v52 = vor.u32 1.1754944e-38, %v303_v38  ;;  %v844_v38 = vld [vmem:[#allocation6 + $0x40] sm:$0xf] }
  0xb8   : > { %v1045_v25 = vpop.eup %1044  ;;  %644 = vmatpush.bf16.msra.mxu2 %v853_v32  ;;  %v965_v32 = vld [vmem:[#allocation6 + $0xa4] sm:$0xf0] }
  0xb9   : > { %v1047_v26 = vpop.eup %1046  ;;  %v1332_v27 = vadd.f32 1.0, %v1045_v25 }
  0xba   : > { %v1049_v28 = vpop.eup %1048  ;;  %v278_v29 = vmul.f32 %v1047_v26, %v273_v22  ;;  %vm283_vm0 = vweird.f32 %v1047_v26  ;;  %v916_v22 = vld [vmem:[#allocation6 + $0xd0] sm:$0xf] }
  0xbb   : > { %v1051_v30 = vpop.eup %1050  ;;  %v293_v31 = vmul.f32 %v1049_v28, %v274_v24  ;;  %1052 = vrcp.f32 %v1332_v27  ;;  %v318_v40 = vand.u32 2147483648, %v1332_v27  ;;  %vm298_vm2 = vweird.f32 %v1049_v28  ;;  %vm284_vm5 = vmor %vm282_vm3, %vm283_vm0 }
  0xbc   : > { %v279_v34 = vsub.f32 1.0, %v278_v29  ;;  %v1335_v35 = vadd.f32 1.0, %v1051_v30  ;;  %v316_v46 = vand.u32 2147483647, %v1332_v27  ;;  %vm299_vm7 = vmor %vm297_vm4, %vm298_vm2  ;;  %vm312_vm9 = vweird.f32 %v1332_v27 }
  0xbd   : > { %v294_v36 = vsub.f32 1.0, %v293_v31  ;;  %v319_v57 = vor.u32 1.1754944e-38, %v318_v40  ;;  %v917_v37 = vor.u32 %v971_v23, %v916_v22 }
  0xbe   : > { %v280_v39 = vmul.f32 %v1047_v26, %v279_v34  ;;  %1054 = vrcp.f32 %v1335_v35  ;;  %v333_v59 = vand.u32 2147483648, %v1335_v35  ;;  %v331_v62 = vand.u32 2147483647, %v1335_v35 }
  0xbf   : > { %v295_v41 = vmul.f32 %v1049_v28, %v294_v36  ;;  %vm1356_vm8 = vcmp.eq.f32.partialorder %v316_v46, 8.507059e+37  ;;  %vm327_vm13 = vweird.f32 %v1335_v35 }
  0xc0   : > { %v281_v45 = vadd.f32 %v1047_v26, %v280_v39  ;;  %vm1365_vm12 = vcmp.eq.f32.partialorder %v331_v62, 8.507059e+37  ;;  %v334_v16 = vor.u32 1.1754944e-38, %v333_v59  ;;  %v953_v39 = vld [vmem:[#allocation6 + $0x44] sm:$0xf0] }
  0xc1   : > { %v1053_v49 = vpop.eup %1052  ;;  %v296_v50 = vadd.f32 %v1049_v28, %v295_v41 }
  0xc2   : > { %v308_v55 = vmul.f32 %v1053_v49, %v1332_v27  ;;  %v285_v56 = vsel %vm284_vm5, %v1047_v26, %v281_v45  ;;  %vm313_vm11 = vweird.f32 %v1053_v49 }
  0xc3   : > { %v290_v60 = vsel %vm1339_vm1, %v289_v43, %v285_v56  ;;  %v300_v61 = vsel %vm299_vm7, %v1049_v28, %v296_v50  ;;  %vm314_vm15 = vmor %vm312_vm9, %vm313_vm11  ;;  %v925_v28 = vor.u32 %v973_v13, %v924_v12  ;;  %v908_v43 = vld [vmem:[#allocation6 + $0xc0] sm:$0xf]  ;;  %vm414_vm1 = vcmask 261120  }
  0xc4   : > { %v1354_v63 = vpop.eup %1054  ;;  %v309_v0 = vsub.f32 1.0, %v308_v55  ;;  %v337_v2 = vsub.f32 1.0, %v290_v60  ;;  %v305_v3 = vsel %vm1344_vm6, %v304_v52, %v300_v61  ;;  %v353_v5 = vrot.slane %v290_v60, 4 }
  0xc5   : > { %v323_v4 = vmul.f32 %v1354_v63, %v1335_v35  ;;  %v338_v6 = vsub.f32 1.0, %v305_v3  ;;  %v354_v11 = vrot.slane %v305_v3, 4  ;;  %vm328_vm14 = vweird.f32 %v1354_v63  ;;  %656 = vmatpush.bf16.msra.mxu3 %v925_v28  ;;  %v934_v28 = vld [vmem:[#allocation6 + $0xf8] sm:$0xf0] }
  0xc6   : > { %v310_v9 = vmul.f32 %v1053_v49, %v309_v0  ;;  %v343_v10 = vrot.slane %v337_v2, 4  ;;  %v357_v25 = vmul.f32 %v353_v5, %v337_v2  ;;  %v359_v26 = vmul.f32 %v353_v5, %v290_v60  ;;  %vm329_vm0 = vmor %vm327_vm13, %vm328_vm14  ;;  %v958_v0 = vld [vmem:[#allocation6 + $0x74] sm:$0xf] }
  0xc7   : > { %v324_v14 = vsub.f32 1.0, %v323_v4  ;;  %v344_v17 = vrot.slane %v338_v6, 4  ;;  %v360_v31 = vmul.f32 %v354_v11, %v305_v3  ;;  %v845_v52 = vor.u32 %v953_v39, %v844_v38  ;;  %v947_v39 = vld [vmem:[#allocation6 + $0x14] sm:$0xf0] }
  0xc8   : > { %v311_v19 = vadd.f32 %v1053_v49, %v310_v9  ;;  %v349_v30 = vmul.f32 %v343_v10, %v290_v60  ;;  %v347_v34 = vmul.f32 %v343_v10, %v337_v2  ;;  %v358_v53 = vmul.f32 %v354_v11, %v338_v6  ;;  %v900_v10 = vld [vmem:[#allocation6 + $0xb0] sm:$0xf]  ;;  %v967_v11 = vld [vmem:[#allocation6 + $0xb4] sm:$0xf0] }
  0xc9   : > { %v325_v24 = vmul.f32 %v1354_v63, %v324_v14  ;;  %v348_v41 = vmul.f32 %v344_v17, %v338_v6  ;;  %v350_v42 = vmul.f32 %v344_v17, %v305_v3  ;;  %657 = vmatpush.bf16.msra.mxu3 %v917_v37  ;;  %v909_v55 = vor.u32 %v969_v44, %v908_v43  ;;  %v836_v6 = vld [vmem:[#allocation6 + $0x30] sm:$0xf]  ;;  %v949_v17 = vld [vmem:[#allocation6 + $0x24] sm:$0xf0]  ;;  %v862_v37 = vld [vmem:[#allocation6 + $0x68] sm:$0xf0] }
  0xca   : > { %v315_v29 = vsel %vm314_vm15, %v1053_v49, %v311_v19  ;;  %645 = vmatpush.bf16.msra.mxu2 %v845_v52  ;;  %v873_v20 = vor.u32 %v958_v0, %v870_v1  ;;  %v837_v22 = vor.u32 %v951_v7, %v836_v6  ;;  %v972_v43 = vld [vmem:[#allocation6 + $0xe4] sm:$0xf]  ;;  %v838_v0 = vld [vmem:[#allocation6 + $0x38] sm:$0xf0]  ;;  %v830_v6 = vld [vmem:[#allocation6 + $0x28] sm:$0xf0] }
  0xcb   : > { %v320_v33 = vsel %vm1356_vm8, %v319_v57, %v315_v29  ;;  %v326_v36 = vadd.f32 %v1354_v63, %v325_v24  ;;  %v901_v29 = vor.u32 %v967_v11, %v900_v10  ;;  %v894_v10 = vld [vmem:[#allocation6 + $0xa8] sm:$0xf0]  ;;  %v946_v11 = vld [vmem:[#allocation6 + $0x14] sm:$0xf] }
  0xcc   : > { %v371_v27 = vmul.f32 %v349_v30, %v320_v33  ;;  %v375_v40 = vmul.f32 %v359_v26, %v320_v33  ;;  %v369_v45 = vmul.f32 %v347_v34, %v320_v33  ;;  %v373_v46 = vmul.f32 %v357_v25, %v320_v33 }
  0xcd   : > { %v330_v47 = vsel %vm329_vm0, %v1354_v63, %v326_v36  ;;  %v339_v48 = vsub.f32 1.0, %v320_v33  ;;  %658 = vmatpush.bf16.msra.mxu3 %v909_v55  ;;  %v956_v36 = vld [vmem:[#allocation6 + $0x64] sm:$0xf]  ;;  %v970_v55 = vld [vmem:[#allocation6 + $0xd4] sm:$0xf] }
  0xce   : > { %v391_v49 = vrot.slane %v371_v27, 4  ;;  %v397_v50 = vrot.slane %v375_v40, 4  ;;  %v335_v51 = vsel %vm1365_vm12, %v334_v16, %v330_v47  ;;  %v828_v16 = vld [vmem:[#allocation6 + $0x20] sm:$0xf]  ;;  %646 = vmatpush.bf16.msra.mxu2 %v837_v22  ;;  %v926_v47 = vld [vmem:[#allocation6 + $0xe8] sm:$0xf0] }
  0xcf   : > { %v372_v54 = vmul.f32 %v350_v42, %v335_v51  ;;  %v376_v35 = vmul.f32 %v360_v31, %v335_v51  ;;  %v370_v58 = vmul.f32 %v348_v41, %v335_v51  ;;  %v363_v59 = vmul.f32 %v349_v30, %v339_v48  ;;  %v892_v30 = vld [vmem:[#allocation6 + $0xa0] sm:$0xf]  ;;  %v961_v22 = vld [vmem:[#allocation6 + $0x84] sm:$0xf0] }
  0xd0   : > { %v406_v56 = vsel %vm401_vm10, %v369_v45, %v391_v49  ;;  %v408_v57 = vsel %vm401_vm10, %v373_v46, %v397_v50  ;;  %v374_v61 = vmul.f32 %v358_v53, %v335_v51  ;;  %v361_v2 = vmul.f32 %v347_v34, %v339_v48  ;;  %v963_v49 = vld [vmem:[#allocation6 + $0x94] sm:$0xf0]  ;;  %v954_v50 = vld [vmem:[#allocation6 + $0x54] sm:$0xf] }
  0xd1   : > { %v412_v60 = vpack.c.bf16 %v408_v57, %v406_v56  ;;  %v392_v62 = vrot.slane %v372_v54, 4  ;;  %v398_v63 = vrot.slane %v376_v35, 4  ;;  %v367_v3 = vmul.f32 %v359_v26, %v339_v48  ;;  %659 = vmatpush.bf16.msra.mxu3 %v901_v29  ;;  %v918_v56 = vld [vmem:[#allocation6 + $0xd8] sm:$0xf0]  ;;  %v952_v57 = vld [vmem:[#allocation6 + $0x44] sm:$0xf] }
  0xd2   : > { %v379_v4 = vrot.slane %v363_v59, 4  ;;  %v340_v5 = vsub.f32 1.0, %v335_v51  ;;  %v365_v13 = vmul.f32 %v357_v25, %v339_v48  ;;  %v829_v38 = vor.u32 %v949_v17, %v828_v16  ;;  %v884_v48 = vld [vmem:[#allocation6 + $0x90] sm:$0xf]  ;;  %v854_v51 = vld [vmem:[#allocation6 + $0x58] sm:$0xf0] }
  0xd3   : > { %424 = vmatpush.bf16.msra.mxu0 %v412_v60  ;;  %v407_v8 = vsel %vm401_vm10, %v370_v58, %v392_v62  ;;  %v409_v9 = vsel %vm401_vm10, %v374_v61, %v398_v63  ;;  %v385_v14 = vrot.slane %v367_v3, 4  ;;  %v893_v44 = vor.u32 %v965_v32, %v892_v30  ;;  %v846_v58 = vld [vmem:[#allocation6 + $0x48] sm:$0xf0]  ;;  %v968_v61 = vld [vmem:[#allocation6 + $0xc4] sm:$0xf] }
  0xd4   : > { %v413_v12 = vpack.c.bf16 %v409_v9, %v407_v8  ;;  %v402_v15 = vsel %vm401_vm10, %v361_v2, %v379_v4  ;;  %v364_v18 = vmul.f32 %v350_v42, %v340_v5  ;;  %v368_v19 = vmul.f32 %v360_v31, %v340_v5  ;;  %v820_v31 = vld [vmem:[#allocation6 + $0x10] sm:$0xf]  ;;  %647 = vmatpush.bf16.msra.mxu2 %v829_v38  ;;  %v910_v62 = vld [vmem:[#allocation6 + $0xc8] sm:$0xf0]  ;;  %v950_v63 = vld [vmem:[#allocation6 + $0x34] sm:$0xf] }
  0xd5   : > { %v404_v23 = vsel %vm401_vm10, %v365_v13, %v385_v14  ;;  %v362_v24 = vmul.f32 %v348_v41, %v340_v5  ;;  %v366_v26 = vmul.f32 %v358_v53, %v340_v5  ;;  %v238_v41 = vld [vmem:[%s1434_s2] sm:$0xf]  ;;  %v937_v42 = vor.u32 %v974_v21, %v934_v28  ;;  %660 = vmatpush.bf16.msra.mxu3 %v893_v44  ;;  %v966_v3 = vld [vmem:[#allocation6 + $0xb4] sm:$0xf]  ;;  %v902_v4 = vld [vmem:[#allocation6 + $0xb8] sm:$0xf0] }
  0xd6   : > { %437 = vmatpush.bf16.msra.mxu1 %v413_v12  ;;  %v410_v25 = vpack.c.bf16 %v404_v23, %v402_v15  ;;  %v380_v33 = vrot.slane %v364_v18, 4  ;;  %v386_v34 = vrot.slane %v368_v19, 4  ;;  %v865_v46 = vor.u32 %v956_v36, %v862_v37  ;;  %v948_v5 = vld [vmem:[#allocation6 + $0x24] sm:$0xf]  ;;  %v822_v12 = vld [vmem:[#allocation6 + $0x18] sm:$0xf0] }
  0xd7   : > { %v821_v52 = vor.u32 %v947_v39, %v820_v31  ;;  %v929_v53 = vor.u32 %v972_v43, %v926_v47  ;;  %v885_v54 = vor.u32 %v963_v49, %v884_v48  ;;  %v857_v35 = vor.u32 %v954_v50, %v854_v51  ;;  %v964_v9 = vld [vmem:[#allocation6 + $0xa4] sm:$0xf]  ;;  %v962_v15 = vld [vmem:[#allocation6 + $0x94] sm:$0xf]  ;;  %v886_v16 = vld [vmem:[#allocation6 + $0x98] sm:$0xf0] }
  0xd8   : > { %425 = vmatpush.bf16.msra.mxu0 %v410_v25  ;;  %v403_v27 = vsel %vm401_vm10, %v362_v24, %v380_v33  ;;  %v405_v40 = vsel %vm401_vm10, %v366_v26, %v386_v34  ;;  %v921_v59 = vor.u32 %v970_v55, %v918_v56  ;;  %v849_v60 = vor.u32 %v952_v57, %v846_v58  ;;  %v812_v18 = vld [vmem:[#allocation6] sm:$0xf]  ;;  %v945_v19 = vld [vmem:[#allocation6 + $0x4] sm:$0xf0]  ;;  %v944_v23 = vld [vmem:[#allocation6 + $0x4] sm:$0xf] }
  0xd9   : > { %v411_v45 = vpack.c.bf16 %v405_v40, %v403_v27  ;;  %648 = vmatpush.bf16.msra.mxu2 %v821_v52  ;;  %661 = vmatpush.bf16.msra.mxu3 %v885_v54  ;;  %v913_v1 = vor.u32 %v968_v61, %v910_v62  ;;  %v841_v2 = vor.u32 %v950_v63, %v838_v0  ;;  %v814_v24 = vld [vmem:[#allocation6 + $0x8] sm:$0xf0]  ;;  %v960_v29 = vld [vmem:[#allocation6 + $0x84] sm:$0xf] }
  0xda   : > { %v905_v7 = vor.u32 %v966_v3, %v902_v4  ;;  %v833_v8 = vor.u32 %v948_v5, %v830_v6  ;;  %v897_v13 = vor.u32 %v964_v9, %v894_v10  ;;  %v825_v14 = vor.u32 %v946_v11, %v822_v12  ;;  %v878_v30 = vld [vmem:[#allocation6 + $0x88] sm:$0xf0] }
  0xdb   : > { %438 = vmatpush.bf16.msra.mxu1 %v411_v45  ;;  %808 = vmatmul.msk.bf16.vlgmr.msra.gmra.mxu0 %vm414_vm1, %v238_v41  ;;  %v889_v17 = vor.u32 %v962_v15, %v886_v16  ;;  %v813_v21 = vor.u32 %v945_v19, %v812_v18  ;;  %v817_v28 = vor.u32 %v944_v23, %v814_v24 }
  0xdc   : > { %668 = vmatpush.bf16.msrb.mxu0 %v873_v20  ;;  %v876_v20 = vld [vmem:[#allocation6 + $0x80] sm:$0xf]  ;;  %v881_v32 = vor.u32 %v960_v29, %v878_v30 }
  0xdd   : > { %v877_v26 = vor.u32 %v961_v22, %v876_v20  ;;  %649 = vmatpush.bf16.msra.mxu2 %v813_v21 }
  0xde   : > { %809 = vmatmul.msk.bf16.vlgmr.msra.gmra.mxu1 %vm414_vm1, %v238_v41 }
  0xdf   : > { %681 = vmatpush.bf16.msrb.mxu1 %v937_v42  ;;  %662 = vmatpush.bf16.msra.mxu3 %v877_v26 }
  0xe0   : > { %669 = vmatpush.bf16.msrb.mxu0 %v865_v46 }
  0xe3   : > { %682 = vmatpush.bf16.msrb.mxu1 %v929_v53 }
  0xe4   : > { %670 = vmatpush.bf16.msrb.mxu0 %v857_v35 }
  0xe7   : > { %683 = vmatpush.bf16.msrb.mxu1 %v921_v59 }
  0xe8   : > { %671 = vmatpush.bf16.msrb.mxu0 %v849_v60 }
  0xeb   : > { %684 = vmatpush.bf16.msrb.mxu1 %v913_v1 }
  0xec   : > { %672 = vmatpush.bf16.msrb.mxu0 %v841_v2 }
  0xef   : > { %685 = vmatpush.bf16.msrb.mxu1 %v905_v7 }
  0xf0   : > { %673 = vmatpush.bf16.msrb.mxu0 %v833_v8 }
  0xf3   : > { %686 = vmatpush.bf16.msrb.mxu1 %v897_v13 }
  0xf4   : > { %674 = vmatpush.bf16.msrb.mxu0 %v825_v14 }
  0xf7   : > { %687 = vmatpush.bf16.msrb.mxu1 %v889_v17 }
  0xf8   : > { %675 = vmatpush.bf16.msrb.mxu0 %v817_v28 }
  0xfb   : > { %688 = vmatpush.bf16.msrb.mxu1 %v881_v32 }
 0x158   : > { %v427_v25 = vpop.f32.mrf.mxu0 }
 0x159   : > { %v448_v33 = vpack.c.bf16 %v427_v25, %v427_v25 }
 0x15b   : > { %v440_v34 = vpop.f32.mrf.mxu1  ;;  %650 = vmatmul.bf16.vlgmr.msra.gmra.mxu2 %v448_v33  ;;  %676 = vmatmul.bf16.vlgmr.msrb.gmra.mxu0 %v448_v33 }
 0x15c   : > { %v449_v36 = vpack.c.bf16 %v440_v34, %v440_v34 }
 0x15e   : > { %663 = vmatmul.bf16.vlgmr.msra.gmra.mxu3 %v449_v36  ;;  %689 = vmatmul.bf16.vlgmr.msrb.gmra.mxu1 %v449_v36 }
 0x160   : > { %v429_v37 = vpop.f32.mrf.mxu0 }
 0x163   : > { %v442_v38 = vpop.f32.mrf.mxu1 }
 0x1d8   : > { %v677_v31 = vpop.f32.mrf.mxu0 }
 0x1db   : > { %v690_v39 = vpop.f32.mrf.mxu1 }
 0x1dc   : > { %v691_v27 = vadd.f32 %v690_v39, %v677_v31 }
 0x1de   : > { %695 = vst [vmem:[%s234_s10 + $0x8] sm:$0xff] %v691_v27  ;;  %v651_v40 = vpop.f32.mrf.mxu2 }
 0x1e0   : > { %v679_v41 = vpop.f32.mrf.mxu0 }
 0x1e1   : > { %v664_v42 = vpop.f32.mrf.mxu3 }
 0x1e2   : > { %v665_v43 = vadd.f32 %v664_v42, %v651_v40 }
 0x1e3   : > { %v692_v44 = vpop.f32.mrf.mxu1 }
 0x1e4   : > { %694 = vst [vmem:[%s234_s10] sm:$0xff] %v665_v43 }
 0x1e5   : > { %1143 = shalt.err (!%p1140_p10)
}
 0x1e6   : > { %983 = dma.vmem_to_hbm [thread:$0]  (%p1286_p7), %s711_s14, 256, %s713_s24, %s697_s19   ;;  %v653_v45 = vpop.f32.mrf.mxu2 }
 0x1e9   : > { %v666_v46 = vpop.f32.mrf.mxu3 }
 0x1ea PF: > { %s724_s20 = sand.u32 1, %s1174_s15   ;;  %p1450_p12 = scmp.ge.s32.totalorder %s1186_s18, 2 }
 0x1eb   : > { %s725_s28 = scalar_lea.sflag [#allocation5], %s724_s20 }
 0x1ec   : > { %p994_p13 = pnand %p1450_p12, %p1254_p6 }
 0x1ee   : > { %p995_p0 = pneg %p994_p13 }
 0x1f0   : > { %1169 = dma.done.wait (%p995_p0), %s725_s28, 256  }
 0x1f1   : > { %1171 = vsyncadd (%p995_p0), %s725_s28, 4294967040  ;;  %p18_p7 = scmp.ge.s32.totalorder %s1272_s29, 4   ;;  %s1451_s15 = smov %s1178_s16 }
 0x1f2   : > { %s1452_s16 = smov %s1182_s17  ;;  %s1453_s17 = smov %s1282_s8 }
 0x1f3   : > { %s1454_s18 = smov %s1272_s29  ;;  %20 = sbr.rel (!%p18_p7) target bundleno = 6 (0x6), region = 85 }
 0x1f8   :  { %731 = vsyncpa [#allocation4], 1 }
 0x1f9   :  { %733 = vsyncpa [#allocation4 + $0x1], 1 }
 0x1fa   :  { %734 = vsyncpa [#allocation7], 1 }
 0x1fb   :  { %735 = vsyncpa [#allocation5], 1 }
 0x1fc   :  { %737 = vsyncpa [#allocation5 + $0x1], 1 }

</bundles_post_ra>
